<compile_context>
chip_gen: v7x
topology: tpu7x:2x2x1
jax: 0.10.0
libtpu: 0.0.40
codegen_flags: <defaults>
</compile_context>

<pallas_src>
import functools

import jax
import jax.numpy as jnp
from jax.experimental import pallas as pl
from jax.experimental.pallas import tpu as pltpu


# --------------------------------------------------------------------------- #
# Kernel
# --------------------------------------------------------------------------- #
def rnn_layer_kernel(x_all_ref, wx_ref, bx_ref, wh_ref, wl_ref, bl_ref,
                     out_ref, oseq_ref, *, T, B, H, F):
    """Whole forward pass (LSTM recurrence + feature/linear heads).

    x_all_ref : [(T+1)*B, I]  time-major frames 0..T-1 followed by itensor
    wx_ref    : [I, 4H+F]     packed [W_ih (i,f,o,g) | W_feat_x]
    bx_ref    : [1, 4H+F]     packed [b_ih+b_hh (i,f,o,g) | b_feat]
    wh_ref    : [H, 4H+F]     packed [W_hh (i,f,o,g) | W_feat_h]
    wl_ref    : [F, 2], bl_ref: [1, 2]
    out_ref   : [B, 2]        final linear output
    oseq_ref  : [B, T*F]      per-step features, lane-packed (reshaped outside)
    """
    G = 4 * H

    # ---- Hoisted input-side projection: ONE MXU push for all steps + itensor,
    #      biases folded in (no per-step bias broadcasts). --------------------
    xproj = (jnp.dot(x_all_ref[...], wx_ref[...],
                     preferred_element_type=jnp.float32)
             + bx_ref[...])                               # [(T+1)*B, 4H+F]

    wh = wh_ref[...]                                      # [H, 4H+F]

    # h_0 = c_0 = 0  =>  h_0 @ W_hh = 0.  State lives in vregs, not VMEM.
    hproj_g = jnp.zeros((B, G), jnp.float32)              # gate h-projection
    c = jnp.zeros((B, H), jnp.float32)

    feats = []
    # T is small and static -> unrolled Python loop over time steps.
    for t in range(T):
        # gates for frame t, columns ordered (i, f, o, g)
        gates = xproj[t * B:(t + 1) * B, :G] + hproj_g    # [B, 4H]

        # Two activation issues instead of four (contiguous lane blocks).
        sig = jax.nn.sigmoid(gates[:, :3 * H])            # i | f | o
        g_g = jnp.tanh(gates[:, 3 * H:])                  # g
        i_g = sig[:, :H]
        f_g = sig[:, H:2 * H]
        o_g = sig[:, 2 * H:3 * H]

        c = f_g * c + i_g * g_g
        h = o_g * jnp.tanh(c)

        # Single fused h-side matmul: feature h-part for step t and the
        # gate h-projection for step t+1 come out of the same push.
        hp = jnp.dot(h, wh, preferred_element_type=jnp.float32)   # [B, 4H+F]
        hproj_g = hp[:, :G]

        # features(cat(h_t, x_next)) where x_next = seq[t+1] (or itensor at the
        # last step); the x-part (+bias) is already in xproj rows (t+1)*B : ...
        feats.append(xproj[(t + 1) * B:(t + 2) * B, G:] + hp[:, G:])   # [B, F]

    # Single lane-dense store of all per-step features ([B, T*F]).
    oseq_ref[...] = jnp.concatenate(feats, axis=1)

    # output = Linear(features at the last step)
    out_ref[...] = (jnp.dot(feats[-1], wl_ref[...],
                            preferred_element_type=jnp.float32)
                    + bl_ref[...])


# --------------------------------------------------------------------------- #
# Wrapper
# --------------------------------------------------------------------------- #
def rnn_layer_forward(isequence, itensor, params):
    """isequence: [B, T, I], itensor: [B, I] -> (output [B, 2], osequence [B, T, F])."""
    B, T, I = isequence.shape
    H = params['w_h_packed'].shape[0]
    G = 4 * H
    F = params['w_h_packed'].shape[1] - G

    seq_tm = jnp.swapaxes(isequence.astype(jnp.float32), 0, 1)       # [T, B, I]
    x_all = jnp.concatenate(
        [seq_tm.reshape(T * B, I), itensor.astype(jnp.float32)], axis=0)  # [(T+1)*B, I]

    out, oseq_packed = pl.pallas_call(
        functools.partial(rnn_layer_kernel, T=T, B=B, H=H, F=F),
        out_shape=(jax.ShapeDtypeStruct((B, 2), jnp.float32),
                   jax.ShapeDtypeStruct((B, T * F), jnp.float32)),
        in_specs=[pl.BlockSpec(memory_space=pltpu.MemorySpace.VMEM)] * 6,
        out_specs=(pl.BlockSpec(memory_space=pltpu.MemorySpace.VMEM),
                   pl.BlockSpec(memory_space=pltpu.MemorySpace.VMEM)),
    )(x_all,
      params['w_x_packed'], params['b_x_packed'],
      params['w_h_packed'], params['wl_t'], params['bl'])

    osequence = oseq_packed.reshape(B, T, F)   # free reshape (lane-packed layout)
    return out, osequence


# --------------------------------------------------------------------------- #
# Parameters (raw PyTorch-shaped) and packing for the kernel
# --------------------------------------------------------------------------- #
def init_raw_params(key, input_dim, hidden_dim, feature_dim):
    """Deterministic synthetic params matching the PyTorch module's shapes."""
    ks = jax.random.split(key, 8)
    s = 1.0 / jnp.sqrt(jnp.float32(hidden_dim))

    def u(k, shape):
        return jax.random.uniform(k, shape, jnp.float32, minval=-s, maxval=s)

    return dict(
        # nn.LSTMCell(input_dim, hidden_dim): gate order (i, f, g, o)
        w_ih=u(ks[0], (4 * hidden_dim, input_dim)),
        w_hh=u(ks[1], (4 * hidden_dim, hidden_dim)),
        b_ih=u(ks[2], (4 * hidden_dim,)),
        b_hh=u(ks[3], (4 * hidden_dim,)),
        # nn.Linear(input_dim + hidden_dim, feature_dim), applied to cat((h, x))
        wf=u(ks[4], (feature_dim, hidden_dim + input_dim)),
        bf=u(ks[5], (feature_dim,)),
        # nn.Linear(feature_dim, 2)
        wl=u(ks[6], (2, feature_dim)),
        bl=u(ks[7], (2,)),
    )


def pack_params(raw):
    """Pre-transpose / pre-permute / pre-concatenate weights for the kernel."""
    H = raw['w_hh'].shape[1]
    # Reorder packed gate columns from PyTorch (i, f, g, o) to (i, f, o, g) so
    # the kernel applies one sigmoid over 3H lanes and one tanh over H lanes.
    perm = jnp.concatenate([jnp.arange(0, H), jnp.arange(H, 2 * H),
                            jnp.arange(3 * H, 4 * H), jnp.arange(2 * H, 3 * H)])

    w_ih_t = raw['w_ih'].T[:, perm]                  # [I, 4H]
    w_hh_t = raw['w_hh'].T[:, perm]                  # [H, 4H]
    b_g = (raw['b_ih'] + raw['b_hh'])[perm]          # [4H]
    wf_h_t = raw['wf'][:, :H].T                      # [H, F]
    wf_x_t = raw['wf'][:, H:].T                      # [I, F]

    return dict(
        w_x_packed=jnp.concatenate([w_ih_t, wf_x_t], axis=1),           # [I, 4H+F]
        b_x_packed=jnp.concatenate([b_g, raw['bf']], axis=0)[None, :],  # [1, 4H+F]
        w_h_packed=jnp.concatenate([w_hh_t, wf_h_t], axis=1),           # [H, 4H+F]
        wl_t=raw['wl'].T,                                               # [F, 2]
        bl=raw['bl'][None, :],                                          # [1, 2]
    )


# --------------------------------------------------------------------------- #
# Pure-JAX reference (mirrors the PyTorch forward, LSTM path)
# --------------------------------------------------------------------------- #
def rnn_layer_forward_ref(isequence, itensor, raw):
    B, T, I = isequence.shape
    H = raw['w_hh'].shape[1]
    h = jnp.zeros((B, H), jnp.float32)
    c = jnp.zeros((B, H), jnp.float32)
    seq = jnp.transpose(isequence, (1, 0, 2))

    w_ih_t = raw['w_ih'].T
    w_hh_t = raw['w_hh'].T
    b = raw['b_ih'] + raw['b_hh']
    wf_t = raw['wf'].T
    wl_t = raw['wl'].T

    def feat(hh, xx):
        return jnp.concatenate([hh, xx], axis=-1) @ wf_t + raw['bf']

    oseq = []
    for t in range(T):
        gates = seq[t] @ w_ih_t + h @ w_hh_t + b
        i_g = jax.nn.sigmoid(gates[:, 0 * H:1 * H])
        f_g = jax.nn.sigmoid(gates[:, 1 * H:2 * H])
        g_g = jnp.tanh(gates[:, 2 * H:3 * H])
        o_g = jax.nn.sigmoid(gates[:, 3 * H:4 * H])
        c = f_g * c + i_g * g_g
        h = o_g * jnp.tanh(c)
        if t != T - 1:
            oseq.append(feat(h, seq[t + 1]))
    last = feat(h, itensor)
    oseq.append(last)
    out = last @ wl_t + raw['bl']
    return out, jnp.transpose(jnp.stack(oseq, 0), (1, 0, 2))


# --------------------------------------------------------------------------- #
if __name__ == "__main__":
    # dict_args equivalent: input_dim=16, rnn_hdim=32, rnn_type='LSTM', feature_dim=16
    B, T, I, H, F = 2, 8, 16, 32, 16

    key = jax.random.PRNGKey(0)
    k_seq, k_ten, k_par = jax.random.split(key, 3)
    isequence = jax.random.normal(k_seq, (B, T, I), jnp.float32)
    itensor = jax.random.normal(k_ten, (B, I), jnp.float32)

    raw_params = init_raw_params(k_par, I, H, F)
    params = pack_params(raw_params)

    out, oseq = jax.jit(rnn_layer_forward)(isequence, itensor, params)
    jax.block_until_ready((out, oseq))

    out_ref, oseq_ref = rnn_layer_forward_ref(isequence, itensor, raw_params)
    assert out.shape == (B, 2) and oseq.shape == (B, T, F)
    assert jnp.allclose(out, out_ref, atol=1e-5, rtol=1e-5)
    assert jnp.allclose(oseq, oseq_ref, atol=1e-5, rtol=1e-5)

    print("KERNEL_OK")
</pallas_src>

<mosaic_0001>
module attributes {stable_mosaic.version = 11 : i64} {
  func.func @rnn_layer_kernel(%arg0: memref<18x16xf32, #tpu.memory_space<vmem>>, %arg1: memref<16x144xf32, #tpu.memory_space<vmem>>, %arg2: memref<1x144xf32, #tpu.memory_space<vmem>>, %arg3: memref<32x144xf32, #tpu.memory_space<vmem>>, %arg4: memref<16x2xf32, #tpu.memory_space<vmem>>, %arg5: memref<1x2xf32, #tpu.memory_space<vmem>>, %arg6: memref<2x2xf32, #tpu.memory_space<vmem>>, %arg7: memref<2x128xf32, #tpu.memory_space<vmem>>) attributes {dimension_semantics = [], scalar_prefetch = 0 : i64, scratch_operands = 0 : i64, tpu.core_type = #tpu.core_type<tc>} {
    %c0 = arith.constant 0 : index
    %c0_0 = arith.constant 0 : index
    %0 = vector.load %arg0[%c0, %c0_0] : memref<18x16xf32, #tpu.memory_space<vmem>>, vector<18x16xf32>
    %c0_1 = arith.constant 0 : index
    %c0_2 = arith.constant 0 : index
    %1 = vector.load %arg1[%c0_1, %c0_2] : memref<16x144xf32, #tpu.memory_space<vmem>>, vector<16x144xf32>
    %cst = arith.constant dense<0.000000e+00> : vector<18x144xf32>
    %2 = tpu.matmul %0, %1, %cst {dimension_numbers = #tpu.dot_dimension_numbers<[1], [0], [0], [1], [0, 0, 1, 1], [], []>} : vector<18x16xf32>, vector<16x144xf32>, vector<18x144xf32> -> vector<18x144xf32>
    %c0_3 = arith.constant 0 : index
    %c0_4 = arith.constant 0 : index
    %3 = vector.load %arg2[%c0_3, %c0_4] : memref<1x144xf32, #tpu.memory_space<vmem>>, vector<1x144xf32>
    %4 = vector.broadcast %3 : vector<1x144xf32> to vector<18x144xf32>
    %5 = arith.addf %2, %4 : vector<18x144xf32>
    %c0_5 = arith.constant 0 : index
    %c0_6 = arith.constant 0 : index
    %6 = vector.load %arg3[%c0_5, %c0_6] : memref<32x144xf32, #tpu.memory_space<vmem>>, vector<32x144xf32>
    %cst_7 = arith.constant 0.000000e+00 : f32
    %7 = vector.broadcast %cst_7 : f32 to vector<2x128xf32>
    %cst_8 = arith.constant 0.000000e+00 : f32
    %8 = vector.broadcast %cst_8 : f32 to vector<2x32xf32>
    %9 = vector.extract_strided_slice %5 {offsets = [0, 0], sizes = [2, 128], strides = [1, 1]} : vector<18x144xf32> to vector<2x128xf32>
    %10 = arith.addf %9, %7 : vector<2x128xf32>
    %11 = vector.extract_strided_slice %10 {offsets = [0, 0], sizes = [2, 96], strides = [1, 1]} : vector<2x128xf32> to vector<2x96xf32>
    %12 = arith.negf %11 : vector<2x96xf32>
    %13 = math.exp %12 : vector<2x96xf32>
    %cst_9 = arith.constant 1.000000e+00 : f32
    %14 = vector.broadcast %cst_9 : f32 to vector<2x96xf32>
    %15 = arith.addf %14, %13 : vector<2x96xf32>
    %16 = arith.divf %14, %15 : vector<2x96xf32>
    %17 = vector.extract_strided_slice %10 {offsets = [0, 96], sizes = [2, 32], strides = [1, 1]} : vector<2x128xf32> to vector<2x32xf32>
    %18 = math.tanh %17 : vector<2x32xf32>
    %19 = vector.extract_strided_slice %16 {offsets = [0, 0], sizes = [2, 32], strides = [1, 1]} : vector<2x96xf32> to vector<2x32xf32>
    %20 = vector.extract_strided_slice %16 {offsets = [0, 32], sizes = [2, 32], strides = [1, 1]} : vector<2x96xf32> to vector<2x32xf32>
    %21 = vector.extract_strided_slice %16 {offsets = [0, 64], sizes = [2, 32], strides = [1, 1]} : vector<2x96xf32> to vector<2x32xf32>
    %22 = arith.mulf %20, %8 : vector<2x32xf32>
    %23 = arith.mulf %19, %18 : vector<2x32xf32>
    %24 = arith.addf %22, %23 : vector<2x32xf32>
    %25 = math.tanh %24 : vector<2x32xf32>
    %26 = arith.mulf %21, %25 : vector<2x32xf32>
    %cst_10 = arith.constant dense<0.000000e+00> : vector<2x144xf32>
    %27 = tpu.matmul %26, %6, %cst_10 {dimension_numbers = #tpu.dot_dimension_numbers<[1], [0], [0], [1], [0, 0, 1, 1], [], []>} : vector<2x32xf32>, vector<32x144xf32>, vector<2x144xf32> -> vector<2x144xf32>
    %28 = vector.extract_strided_slice %27 {offsets = [0, 0], sizes = [2, 128], strides = [1, 1]} : vector<2x144xf32> to vector<2x128xf32>
    %29 = vector.extract_strided_slice %5 {offsets = [2, 128], sizes = [2, 16], strides = [1, 1]} : vector<18x144xf32> to vector<2x16xf32>
    %30 = vector.extract_strided_slice %27 {offsets = [0, 128], sizes = [2, 16], strides = [1, 1]} : vector<2x144xf32> to vector<2x16xf32>
    %31 = arith.addf %29, %30 : vector<2x16xf32>
    %32 = vector.extract_strided_slice %5 {offsets = [2, 0], sizes = [2, 128], strides = [1, 1]} : vector<18x144xf32> to vector<2x128xf32>
    %33 = arith.addf %32, %28 : vector<2x128xf32>
    %34 = vector.extract_strided_slice %33 {offsets = [0, 0], sizes = [2, 96], strides = [1, 1]} : vector<2x128xf32> to vector<2x96xf32>
    %35 = arith.negf %34 : vector<2x96xf32>
    %36 = math.exp %35 : vector<2x96xf32>
    %cst_11 = arith.constant 1.000000e+00 : f32
    %37 = vector.broadcast %cst_11 : f32 to vector<2x96xf32>
    %38 = arith.addf %37, %36 : vector<2x96xf32>
    %39 = arith.divf %37, %38 : vector<2x96xf32>
    %40 = vector.extract_strided_slice %33 {offsets = [0, 96], sizes = [2, 32], strides = [1, 1]} : vector<2x128xf32> to vector<2x32xf32>
    %41 = math.tanh %40 : vector<2x32xf32>
    %42 = vector.extract_strided_slice %39 {offsets = [0, 0], sizes = [2, 32], strides = [1, 1]} : vector<2x96xf32> to vector<2x32xf32>
    %43 = vector.extract_strided_slice %39 {offsets = [0, 32], sizes = [2, 32], strides = [1, 1]} : vector<2x96xf32> to vector<2x32xf32>
    %44 = vector.extract_strided_slice %39 {offsets = [0, 64], sizes = [2, 32], strides = [1, 1]} : vector<2x96xf32> to vector<2x32xf32>
    %45 = arith.mulf %43, %24 : vector<2x32xf32>
    %46 = arith.mulf %42, %41 : vector<2x32xf32>
    %47 = arith.addf %45, %46 : vector<2x32xf32>
    %48 = math.tanh %47 : vector<2x32xf32>
    %49 = arith.mulf %44, %48 : vector<2x32xf32>
    %cst_12 = arith.constant dense<0.000000e+00> : vector<2x144xf32>
    %50 = tpu.matmul %49, %6, %cst_12 {dimension_numbers = #tpu.dot_dimension_numbers<[1], [0], [0], [1], [0, 0, 1, 1], [], []>} : vector<2x32xf32>, vector<32x144xf32>, vector<2x144xf32> -> vector<2x144xf32>
    %51 = vector.extract_strided_slice %50 {offsets = [0, 0], sizes = [2, 128], strides = [1, 1]} : vector<2x144xf32> to vector<2x128xf32>
    %52 = vector.extract_strided_slice %5 {offsets = [4, 128], sizes = [2, 16], strides = [1, 1]} : vector<18x144xf32> to vector<2x16xf32>
    %53 = vector.extract_strided_slice %50 {offsets = [0, 128], sizes = [2, 16], strides = [1, 1]} : vector<2x144xf32> to vector<2x16xf32>
    %54 = arith.addf %52, %53 : vector<2x16xf32>
    %55 = vector.extract_strided_slice %5 {offsets = [4, 0], sizes = [2, 128], strides = [1, 1]} : vector<18x144xf32> to vector<2x128xf32>
    %56 = arith.addf %55, %51 : vector<2x128xf32>
    %57 = vector.extract_strided_slice %56 {offsets = [0, 0], sizes = [2, 96], strides = [1, 1]} : vector<2x128xf32> to vector<2x96xf32>
    %58 = arith.negf %57 : vector<2x96xf32>
    %59 = math.exp %58 : vector<2x96xf32>
    %cst_13 = arith.constant 1.000000e+00 : f32
    %60 = vector.broadcast %cst_13 : f32 to vector<2x96xf32>
    %61 = arith.addf %60, %59 : vector<2x96xf32>
    %62 = arith.divf %60, %61 : vector<2x96xf32>
    %63 = vector.extract_strided_slice %56 {offsets = [0, 96], sizes = [2, 32], strides = [1, 1]} : vector<2x128xf32> to vector<2x32xf32>
    %64 = math.tanh %63 : vector<2x32xf32>
    %65 = vector.extract_strided_slice %62 {offsets = [0, 0], sizes = [2, 32], strides = [1, 1]} : vector<2x96xf32> to vector<2x32xf32>
    %66 = vector.extract_strided_slice %62 {offsets = [0, 32], sizes = [2, 32], strides = [1, 1]} : vector<2x96xf32> to vector<2x32xf32>
    %67 = vector.extract_strided_slice %62 {offsets = [0, 64], sizes = [2, 32], strides = [1, 1]} : vector<2x96xf32> to vector<2x32xf32>
    %68 = arith.mulf %66, %47 : vector<2x32xf32>
    %69 = arith.mulf %65, %64 : vector<2x32xf32>
    %70 = arith.addf %68, %69 : vector<2x32xf32>
    %71 = math.tanh %70 : vector<2x32xf32>
    %72 = arith.mulf %67, %71 : vector<2x32xf32>
    %cst_14 = arith.constant dense<0.000000e+00> : vector<2x144xf32>
    %73 = tpu.matmul %72, %6, %cst_14 {dimension_numbers = #tpu.dot_dimension_numbers<[1], [0], [0], [1], [0, 0, 1, 1], [], []>} : vector<2x32xf32>, vector<32x144xf32>, vector<2x144xf32> -> vector<2x144xf32>
    %74 = vector.extract_strided_slice %73 {offsets = [0, 0], sizes = [2, 128], strides = [1, 1]} : vector<2x144xf32> to vector<2x128xf32>
    %75 = vector.extract_strided_slice %5 {offsets = [6, 128], sizes = [2, 16], strides = [1, 1]} : vector<18x144xf32> to vector<2x16xf32>
    %76 = vector.extract_strided_slice %73 {offsets = [0, 128], sizes = [2, 16], strides = [1, 1]} : vector<2x144xf32> to vector<2x16xf32>
    %77 = arith.addf %75, %76 : vector<2x16xf32>
    %78 = vector.extract_strided_slice %5 {offsets = [6, 0], sizes = [2, 128], strides = [1, 1]} : vector<18x144xf32> to vector<2x128xf32>
    %79 = arith.addf %78, %74 : vector<2x128xf32>
    %80 = vector.extract_strided_slice %79 {offsets = [0, 0], sizes = [2, 96], strides = [1, 1]} : vector<2x128xf32> to vector<2x96xf32>
    %81 = arith.negf %80 : vector<2x96xf32>
    %82 = math.exp %81 : vector<2x96xf32>
    %cst_15 = arith.constant 1.000000e+00 : f32
    %83 = vector.broadcast %cst_15 : f32 to vector<2x96xf32>
    %84 = arith.addf %83, %82 : vector<2x96xf32>
    %85 = arith.divf %83, %84 : vector<2x96xf32>
    %86 = vector.extract_strided_slice %79 {offsets = [0, 96], sizes = [2, 32], strides = [1, 1]} : vector<2x128xf32> to vector<2x32xf32>
    %87 = math.tanh %86 : vector<2x32xf32>
    %88 = vector.extract_strided_slice %85 {offsets = [0, 0], sizes = [2, 32], strides = [1, 1]} : vector<2x96xf32> to vector<2x32xf32>
    %89 = vector.extract_strided_slice %85 {offsets = [0, 32], sizes = [2, 32], strides = [1, 1]} : vector<2x96xf32> to vector<2x32xf32>
    %90 = vector.extract_strided_slice %85 {offsets = [0, 64], sizes = [2, 32], strides = [1, 1]} : vector<2x96xf32> to vector<2x32xf32>
    %91 = arith.mulf %89, %70 : vector<2x32xf32>
    %92 = arith.mulf %88, %87 : vector<2x32xf32>
    %93 = arith.addf %91, %92 : vector<2x32xf32>
    %94 = math.tanh %93 : vector<2x32xf32>
    %95 = arith.mulf %90, %94 : vector<2x32xf32>
    %cst_16 = arith.constant dense<0.000000e+00> : vector<2x144xf32>
    %96 = tpu.matmul %95, %6, %cst_16 {dimension_numbers = #tpu.dot_dimension_numbers<[1], [0], [0], [1], [0, 0, 1, 1], [], []>} : vector<2x32xf32>, vector<32x144xf32>, vector<2x144xf32> -> vector<2x144xf32>
    %97 = vector.extract_strided_slice %96 {offsets = [0, 0], sizes = [2, 128], strides = [1, 1]} : vector<2x144xf32> to vector<2x128xf32>
    %98 = vector.extract_strided_slice %5 {offsets = [8, 128], sizes = [2, 16], strides = [1, 1]} : vector<18x144xf32> to vector<2x16xf32>
    %99 = vector.extract_strided_slice %96 {offsets = [0, 128], sizes = [2, 16], strides = [1, 1]} : vector<2x144xf32> to vector<2x16xf32>
    %100 = arith.addf %98, %99 : vector<2x16xf32>
    %101 = vector.extract_strided_slice %5 {offsets = [8, 0], sizes = [2, 128], strides = [1, 1]} : vector<18x144xf32> to vector<2x128xf32>
    %102 = arith.addf %101, %97 : vector<2x128xf32>
    %103 = vector.extract_strided_slice %102 {offsets = [0, 0], sizes = [2, 96], strides = [1, 1]} : vector<2x128xf32> to vector<2x96xf32>
    %104 = arith.negf %103 : vector<2x96xf32>
    %105 = math.exp %104 : vector<2x96xf32>
    %cst_17 = arith.constant 1.000000e+00 : f32
    %106 = vector.broadcast %cst_17 : f32 to vector<2x96xf32>
    %107 = arith.addf %106, %105 : vector<2x96xf32>
    %108 = arith.divf %106, %107 : vector<2x96xf32>
    %109 = vector.extract_strided_slice %102 {offsets = [0, 96], sizes = [2, 32], strides = [1, 1]} : vector<2x128xf32> to vector<2x32xf32>
    %110 = math.tanh %109 : vector<2x32xf32>
    %111 = vector.extract_strided_slice %108 {offsets = [0, 0], sizes = [2, 32], strides = [1, 1]} : vector<2x96xf32> to vector<2x32xf32>
    %112 = vector.extract_strided_slice %108 {offsets = [0, 32], sizes = [2, 32], strides = [1, 1]} : vector<2x96xf32> to vector<2x32xf32>
    %113 = vector.extract_strided_slice %108 {offsets = [0, 64], sizes = [2, 32], strides = [1, 1]} : vector<2x96xf32> to vector<2x32xf32>
    %114 = arith.mulf %112, %93 : vector<2x32xf32>
    %115 = arith.mulf %111, %110 : vector<2x32xf32>
    %116 = arith.addf %114, %115 : vector<2x32xf32>
    %117 = math.tanh %116 : vector<2x32xf32>
    %118 = arith.mulf %113, %117 : vector<2x32xf32>
    %cst_18 = arith.constant dense<0.000000e+00> : vector<2x144xf32>
    %119 = tpu.matmul %118, %6, %cst_18 {dimension_numbers = #tpu.dot_dimension_numbers<[1], [0], [0], [1], [0, 0, 1, 1], [], []>} : vector<2x32xf32>, vector<32x144xf32>, vector<2x144xf32> -> vector<2x144xf32>
    %120 = vector.extract_strided_slice %119 {offsets = [0, 0], sizes = [2, 128], strides = [1, 1]} : vector<2x144xf32> to vector<2x128xf32>
    %121 = vector.extract_strided_slice %5 {offsets = [10, 128], sizes = [2, 16], strides = [1, 1]} : vector<18x144xf32> to vector<2x16xf32>
    %122 = vector.extract_strided_slice %119 {offsets = [0, 128], sizes = [2, 16], strides = [1, 1]} : vector<2x144xf32> to vector<2x16xf32>
    %123 = arith.addf %121, %122 : vector<2x16xf32>
    %124 = vector.extract_strided_slice %5 {offsets = [10, 0], sizes = [2, 128], strides = [1, 1]} : vector<18x144xf32> to vector<2x128xf32>
    %125 = arith.addf %124, %120 : vector<2x128xf32>
    %126 = vector.extract_strided_slice %125 {offsets = [0, 0], sizes = [2, 96], strides = [1, 1]} : vector<2x128xf32> to vector<2x96xf32>
    %127 = arith.negf %126 : vector<2x96xf32>
    %128 = math.exp %127 : vector<2x96xf32>
    %cst_19 = arith.constant 1.000000e+00 : f32
    %129 = vector.broadcast %cst_19 : f32 to vector<2x96xf32>
    %130 = arith.addf %129, %128 : vector<2x96xf32>
    %131 = arith.divf %129, %130 : vector<2x96xf32>
    %132 = vector.extract_strided_slice %125 {offsets = [0, 96], sizes = [2, 32], strides = [1, 1]} : vector<2x128xf32> to vector<2x32xf32>
    %133 = math.tanh %132 : vector<2x32xf32>
    %134 = vector.extract_strided_slice %131 {offsets = [0, 0], sizes = [2, 32], strides = [1, 1]} : vector<2x96xf32> to vector<2x32xf32>
    %135 = vector.extract_strided_slice %131 {offsets = [0, 32], sizes = [2, 32], strides = [1, 1]} : vector<2x96xf32> to vector<2x32xf32>
    %136 = vector.extract_strided_slice %131 {offsets = [0, 64], sizes = [2, 32], strides = [1, 1]} : vector<2x96xf32> to vector<2x32xf32>
    %137 = arith.mulf %135, %116 : vector<2x32xf32>
    %138 = arith.mulf %134, %133 : vector<2x32xf32>
    %139 = arith.addf %137, %138 : vector<2x32xf32>
    %140 = math.tanh %139 : vector<2x32xf32>
    %141 = arith.mulf %136, %140 : vector<2x32xf32>
    %cst_20 = arith.constant dense<0.000000e+00> : vector<2x144xf32>
    %142 = tpu.matmul %141, %6, %cst_20 {dimension_numbers = #tpu.dot_dimension_numbers<[1], [0], [0], [1], [0, 0, 1, 1], [], []>} : vector<2x32xf32>, vector<32x144xf32>, vector<2x144xf32> -> vector<2x144xf32>
    %143 = vector.extract_strided_slice %142 {offsets = [0, 0], sizes = [2, 128], strides = [1, 1]} : vector<2x144xf32> to vector<2x128xf32>
    %144 = vector.extract_strided_slice %5 {offsets = [12, 128], sizes = [2, 16], strides = [1, 1]} : vector<18x144xf32> to vector<2x16xf32>
    %145 = vector.extract_strided_slice %142 {offsets = [0, 128], sizes = [2, 16], strides = [1, 1]} : vector<2x144xf32> to vector<2x16xf32>
    %146 = arith.addf %144, %145 : vector<2x16xf32>
    %147 = vector.extract_strided_slice %5 {offsets = [12, 0], sizes = [2, 128], strides = [1, 1]} : vector<18x144xf32> to vector<2x128xf32>
    %148 = arith.addf %147, %143 : vector<2x128xf32>
    %149 = vector.extract_strided_slice %148 {offsets = [0, 0], sizes = [2, 96], strides = [1, 1]} : vector<2x128xf32> to vector<2x96xf32>
    %150 = arith.negf %149 : vector<2x96xf32>
    %151 = math.exp %150 : vector<2x96xf32>
    %cst_21 = arith.constant 1.000000e+00 : f32
    %152 = vector.broadcast %cst_21 : f32 to vector<2x96xf32>
    %153 = arith.addf %152, %151 : vector<2x96xf32>
    %154 = arith.divf %152, %153 : vector<2x96xf32>
    %155 = vector.extract_strided_slice %148 {offsets = [0, 96], sizes = [2, 32], strides = [1, 1]} : vector<2x128xf32> to vector<2x32xf32>
    %156 = math.tanh %155 : vector<2x32xf32>
    %157 = vector.extract_strided_slice %154 {offsets = [0, 0], sizes = [2, 32], strides = [1, 1]} : vector<2x96xf32> to vector<2x32xf32>
    %158 = vector.extract_strided_slice %154 {offsets = [0, 32], sizes = [2, 32], strides = [1, 1]} : vector<2x96xf32> to vector<2x32xf32>
    %159 = vector.extract_strided_slice %154 {offsets = [0, 64], sizes = [2, 32], strides = [1, 1]} : vector<2x96xf32> to vector<2x32xf32>
    %160 = arith.mulf %158, %139 : vector<2x32xf32>
    %161 = arith.mulf %157, %156 : vector<2x32xf32>
    %162 = arith.addf %160, %161 : vector<2x32xf32>
    %163 = math.tanh %162 : vector<2x32xf32>
    %164 = arith.mulf %159, %163 : vector<2x32xf32>
    %cst_22 = arith.constant dense<0.000000e+00> : vector<2x144xf32>
    %165 = tpu.matmul %164, %6, %cst_22 {dimension_numbers = #tpu.dot_dimension_numbers<[1], [0], [0], [1], [0, 0, 1, 1], [], []>} : vector<2x32xf32>, vector<32x144xf32>, vector<2x144xf32> -> vector<2x144xf32>
    %166 = vector.extract_strided_slice %165 {offsets = [0, 0], sizes = [2, 128], strides = [1, 1]} : vector<2x144xf32> to vector<2x128xf32>
    %167 = vector.extract_strided_slice %5 {offsets = [14, 128], sizes = [2, 16], strides = [1, 1]} : vector<18x144xf32> to vector<2x16xf32>
    %168 = vector.extract_strided_slice %165 {offsets = [0, 128], sizes = [2, 16], strides = [1, 1]} : vector<2x144xf32> to vector<2x16xf32>
    %169 = arith.addf %167, %168 : vector<2x16xf32>
    %170 = vector.extract_strided_slice %5 {offsets = [14, 0], sizes = [2, 128], strides = [1, 1]} : vector<18x144xf32> to vector<2x128xf32>
    %171 = arith.addf %170, %166 : vector<2x128xf32>
    %172 = vector.extract_strided_slice %171 {offsets = [0, 0], sizes = [2, 96], strides = [1, 1]} : vector<2x128xf32> to vector<2x96xf32>
    %173 = arith.negf %172 : vector<2x96xf32>
    %174 = math.exp %173 : vector<2x96xf32>
    %cst_23 = arith.constant 1.000000e+00 : f32
    %175 = vector.broadcast %cst_23 : f32 to vector<2x96xf32>
    %176 = arith.addf %175, %174 : vector<2x96xf32>
    %177 = arith.divf %175, %176 : vector<2x96xf32>
    %178 = vector.extract_strided_slice %171 {offsets = [0, 96], sizes = [2, 32], strides = [1, 1]} : vector<2x128xf32> to vector<2x32xf32>
    %179 = math.tanh %178 : vector<2x32xf32>
    %180 = vector.extract_strided_slice %177 {offsets = [0, 0], sizes = [2, 32], strides = [1, 1]} : vector<2x96xf32> to vector<2x32xf32>
    %181 = vector.extract_strided_slice %177 {offsets = [0, 32], sizes = [2, 32], strides = [1, 1]} : vector<2x96xf32> to vector<2x32xf32>
    %182 = vector.extract_strided_slice %177 {offsets = [0, 64], sizes = [2, 32], strides = [1, 1]} : vector<2x96xf32> to vector<2x32xf32>
    %183 = arith.mulf %181, %162 : vector<2x32xf32>
    %184 = arith.mulf %180, %179 : vector<2x32xf32>
    %185 = arith.addf %183, %184 : vector<2x32xf32>
    %186 = math.tanh %185 : vector<2x32xf32>
    %187 = arith.mulf %182, %186 : vector<2x32xf32>
    %cst_24 = arith.constant dense<0.000000e+00> : vector<2x144xf32>
    %188 = tpu.matmul %187, %6, %cst_24 {dimension_numbers = #tpu.dot_dimension_numbers<[1], [0], [0], [1], [0, 0, 1, 1], [], []>} : vector<2x32xf32>, vector<32x144xf32>, vector<2x144xf32> -> vector<2x144xf32>
    %189 = vector.extract_strided_slice %5 {offsets = [16, 128], sizes = [2, 16], strides = [1, 1]} : vector<18x144xf32> to vector<2x16xf32>
    %190 = vector.extract_strided_slice %188 {offsets = [0, 128], sizes = [2, 16], strides = [1, 1]} : vector<2x144xf32> to vector<2x16xf32>
    %191 = arith.addf %189, %190 : vector<2x16xf32>
    %192 = tpu.concatenate %31, %54, %77, %100, %123, %146, %169, %191 in 1 : vector<2x16xf32>, vector<2x16xf32>, vector<2x16xf32>, vector<2x16xf32>, vector<2x16xf32>, vector<2x16xf32>, vector<2x16xf32>, vector<2x16xf32> -> vector<2x128xf32>
    %c0_25 = arith.constant 0 : index
    %c0_26 = arith.constant 0 : index
    %193 = vector.load %arg7[%c0_25, %c0_26] : memref<2x128xf32, #tpu.memory_space<vmem>>, vector<2x128xf32>
    tpu.vector_store %arg7[%c0_25, %c0_26], %192 {strides = array<i32>} : memref<2x128xf32, #tpu.memory_space<vmem>>, vector<2x128xf32>,
    %c0_27 = arith.constant 0 : index
    %c0_28 = arith.constant 0 : index
    %194 = vector.load %arg4[%c0_27, %c0_28] : memref<16x2xf32, #tpu.memory_space<vmem>>, vector<16x2xf32>
    %cst_29 = arith.constant dense<0.000000e+00> : vector<2x2xf32>
    %195 = tpu.matmul %191, %194, %cst_29 {dimension_numbers = #tpu.dot_dimension_numbers<[1], [0], [0], [1], [0, 0, 1, 1], [], []>} : vector<2x16xf32>, vector<16x2xf32>, vector<2x2xf32> -> vector<2x2xf32>
    %c0_30 = arith.constant 0 : index
    %c0_31 = arith.constant 0 : index
    %196 = vector.load %arg5[%c0_30, %c0_31] : memref<1x2xf32, #tpu.memory_space<vmem>>, vector<1x2xf32>
    %197 = vector.broadcast %196 : vector<1x2xf32> to vector<2x2xf32>
    %198 = arith.addf %195, %197 : vector<2x2xf32>
    %c0_32 = arith.constant 0 : index
    %c0_33 = arith.constant 0 : index
    %199 = vector.load %arg6[%c0_32, %c0_33] : memref<2x2xf32, #tpu.memory_space<vmem>>, vector<2x2xf32>
    tpu.vector_store %arg6[%c0_32, %c0_33], %198 {strides = array<i32>} : memref<2x2xf32, #tpu.memory_space<vmem>>, vector<2x2xf32>,
    return
  }
}

</mosaic_0001>

<bundles_post_ra>
// kernel: rnn_layer_forward.1
= control target key start
LH: loop header
LB: loop body
LE: loop exit
PB: predicated region body
PF: predicated region fallthrough
CT: control target
= control target key end

     0   :  { %v35_v3 = vlaneseq  ;;  %v1376_v6 = vmov 0.0   ;;  %s1645_s0 = inlined_call_operand.vmem [shape: f32[18,16], index: 0, kind: input, shape index: {}]   ;;  %s1646_s1 = inlined_call_operand.vmem [shape: f32[16,144], index: 1, kind: input, shape index: {}]   ;;  %s1647_s2 = inlined_call_operand.vmem [shape: f32[1,144], index: 2, kind: input, shape index: {}]   ;;  %s1648_s3 = inlined_call_operand.vmem [shape: f32[32,144], index: 3, kind: input, shape index: {}]   ;;  %s1649_s4 = inlined_call_operand.vmem [shape: f32[16,2], index: 4, kind: input, shape index: {}]   ;;  %s1650_s5 = inlined_call_operand.vmem [shape: f32[1,2], index: 5, kind: input, shape index: {}]   ;;  %s1651_s6 = inlined_call_operand.hbm [shape: f32[2,2], index: 6, kind: output, shape index: {0}]   ;;  %s1652_s7 = inlined_call_operand.vmem [shape: f32[2,128], index: 7, kind: output, shape index: {1}]  }
   0x1   :  { %v30_v0 = vld [vmem:[%s1646_s1 + $0x8] sm:$0xff]  ;;  %v32_v1 = vld [vmem:[%s1646_s1 + $0x18] sm:$0xff]  ;;  %v29_v2 = vld [vmem:[%s1646_s1] sm:$0xff]  ;;  %119 = vmatprep.mubr.f32.mxu0 %v1376_v6  ;;  %240 = vmatprep.mubr.f32.mxu1 %v1376_v6 }
   0x2   :  { %v1203_v4 = vpack.c.bf16 %v32_v1, %v30_v0  ;;  %v31_v5 = vld [vmem:[%s1646_s1 + $0x10] sm:$0xff]  ;;  %v36_v8 = vshrl.u32 %v35_v3, 7 }
   0x3   :  { %v1205_v7 = vpack.c.bf16 %v31_v5, %v29_v2 }
   0x4   :  { %13 = vsyncpa [#allocation3], 0  ;;  %1204 = vmatprep.subr.bf16.mxu0 %v1203_v4  ;;  %v33_v9 = vld [vmem:[%s1647_s2] sm:$0x3]  ;;  %vm45_vm0 = vcmask 130048   ;;  %v41_v11 = vsub.s32 1, %v36_v8 }
   0x5   :  { %1206 = vmatpush1.bf16.msra.mxu0 %v1205_v7  ;;  %v26_v10 = vld [vmem:[%s1645_s0] sm:$0xff]  ;;  %v37_v13 = vsub.s32 0, %v36_v8  ;;  %s1377_s1 = smov 32   ;;  %v138_v28 = vld [vmem:[%s1648_s3 + $0x8] sm:$0xff]  ;;  %v140_v29 = vld [vmem:[%s1648_s3 + $0x18] sm:$0xff]  ;;  %vm173_vm1 = vcmask 261120  }
   0x6   :  { %v1447_v12 = vrot.slane %v33_v9, %v41_v11  ;;  %v137_v30 = vld [vmem:[%s1648_s3] sm:$0xff]  ;;  %v1471_v31 = vpack.c.bf16 %v140_v29, %v138_v28  ;;  %v139_v32 = vld [vmem:[%s1648_s3 + $0x10] sm:$0xff]  ;;  %v142_v33 = vld [vmem:[%s1648_s3 + $0x28] sm:$0xff]  ;;  %s1380_s9 = smov 48   ;;  %s1381_s10 = smov 80   ;;  %vm1384_vm2 = vmmov 0  }
   0x7   :  { %v1451_v14 = vrot.slane %v33_v9, %v37_v13  ;;  %v144_v34 = vld [vmem:[%s1648_s3 + $0x38] sm:$0xff]  ;;  %v1482_v35 = vpack.c.bf16 %v139_v32, %v137_v30  ;;  %v141_v37 = vld [vmem:[%s1648_s3 + $0x20] sm:$0xff]  ;;  %v143_v38 = vld [vmem:[%s1648_s3 + $0x30] sm:$0xff]  ;;  %s1378_s3 = smov 64   ;;  %s1383_s11 = smov 96   ;;  %vm1060_vm3 = vcmask 392192  }
   0x8   :  { %1172 = vmatmul.mubr.msk.f32.vlgmr.msra.gmra.mrb[0].mxu0 %vm45_vm0, %v26_v10  ;;  %v1484_v36 = vpack.c.bf16 %v144_v34, %v142_v33  ;;  %1208 = vmatprep.subr.bf16.mxu1 %v1471_v31  ;;  %v1495_v39 = vpack.c.bf16 %v143_v38, %v141_v37  ;;  %v27_v59 = vld [vmem:[%s1645_s0 + $0x8] sm:$0xff]  ;;  %v28_v60 = vld [vmem:[%s1645_s0 + $0x10] sm:$0x3]  ;;  %s1379_s0 = smov 16   ;;  %vm1062_vm4 = vcmask 523264   ;;  %vm1064_vm5 = vcmask 654336  }
   0x9   :  { %125 = vmatprep.mubr.f32.mxu0 %v1376_v6  ;;  %1216 = vmatprep.subr.bf16.mxu0 %v1471_v31  ;;  %vm1066_vm6 = vcmask 785408   ;;  %vm1068_vm7 = vcmask 916480   ;;  %s1386_s18 = smov [#allocation2]   ;;  %vm1152_vm8 = vcmask 9216  }
   0xa   :  { %1210 = vmatpush1.bf16.msra.mxu1 %v1482_v35  ;;  %1218 = vmatpush1.bf16.msra.mxu0 %v1482_v35  ;;  %s1160_s19 = sshll.u32 %s1386_s18, 4  ;;  %s1161_s19 = int_to_ptr.vmem [resolvable:$true] %s1160_s19 }
   0xb   :  { %1212 = vmatprep.subr.bf16.mxu1 %v1484_v36  ;;  %1220 = vmatprep.subr.bf16.mxu0 %v1484_v36  ;;  %s1352_s20 = scalar_lea.vmem %s1161_s19, 32  ;;  %p1357_p1 = scmp.lt.s32.totalorder %s1161_s19, %s1161_s19 }
   0xc   :  { %1173 = vmatmul.mubr.msk.f32.gmra.mrb[2].mxu0 %vm45_vm0, %v27_v59  ;;  %p1353_p0 = scmp.ne.s32.totalorder %s1161_s19, %s1352_s20  ;;  %p1358_p2 = scmp.lt.s32.totalorder %s1352_s20, %s1352_s20 }
   0xd   :  { %131 = vmatprep.mubr.f32.mxu0 %v1376_v6 }
   0xe   :  { %1214 = vmatpush1.bf16.msra.mxu1 %v1495_v39  ;;  %1222 = vmatpush1.bf16.msra.mxu0 %v1495_v39  ;;  %p1359_p3 = por %p1358_p2, %p1357_p1 }
   0xf   :  { %1224 = vmatprep.subr.bf16.mxu1 %v1471_v31  ;;  %1232 = vmatprep.subr.bf16.mxu0 %v1471_v31 }
  0x10   :  { %1174 = vmatmul.mubr.msk.f32.gmra.mrb[4].mxu0 %vm45_vm0, %v28_v60  ;;  %p1360_p4 = pnand %p1359_p3, %p1353_p0 }
  0x11   :  { %352 = vmatprep.mubr.f32.mxu0 %v1376_v6 }
  0xdb   :  { %v121_v15 = vpop.f32.mrb[0].mxu0 }
  0xdc   :  { %v1454_v16 = vadd.f32 %v121_v15, %v1451_v14  ;;  %v1456_v17 = vpop.f32.mrb[1].mxu0 }
  0xde   :  { %1288 = vtanh.f32 %v1454_v16  ;;  %v1175_v19 = vmul.f32 -1.442695, %v1454_v16 }
  0xdf   :  { %v1529_v1 = vpop.f32.mrb[2].mxu0 }
  0xe0   :  { %1290 = vpow2.f32 %v1175_v19  ;;  %v1531_v2 = vpop.f32.mrb[3].mxu0 }
  0xe8   :  { %v1289_v18 = vpop.eup %1288 }
  0xe9   :  { %155 = vrot.lane.b32.xlu0 %v1289_v18, %s1377_s1 }
  0xea   :  { %v1291_v20 = vpop.eup %1290 }
  0xeb   :  { %v149_v21 = vadd.f32 1.0, %v1291_v20 }
  0xed   :  { %1292 = vrcp.f32 %v149_v21 }
  0xf7   :  { %v1293_v22 = vpop.eup %1292 }
  0xf8   :  { %v153_v25 = vmul.f32 0.0, %v1293_v22 }
 0x15b   :  { %v156_v23 = vpop.permute.xlu0 %155 }
 0x15c   :  { %v158_v24 = vmul.f32 %v1293_v22, %v156_v23 }
 0x15e   :  { %160 = vrot.lane.b32.xlu0 %v158_v24, %s1377_s1 }
 0x1d0   :  { %v161_v26 = vpop.permute.xlu0 %160 }
 0x1d1   :  { %v163_v27 = vadd.f32 %v161_v26, %v153_v25 }
 0x1d3   :  { %1294 = vtanh.f32 %v163_v27  ;;  %v263_v55 = vrot.slane %v163_v27, 6 }
 0x1dd   :  { %v1295_v40 = vpop.eup %1294 }
 0x1de   :  { %166 = vrot.lane.b32.xlu1 %v1295_v40, %s1377_s1 }
 0x250   :  { %v167_v41 = vpop.permute.xlu1 %166 }
 0x251   :  { %v169_v42 = vmul.f32 %v1293_v22, %v167_v41 }
 0x253   :  { %171 = vrot.lane.b32.xlu1 %v169_v42, %s1378_s3 }
 0x2c5   :  { %v172_v43 = vpop.permute.xlu1 %171 }
 0x2c6   :  { %1176 = vmatmul.mubr.msk.f32.vlgmr.msra.gmra.mrb[0].mxu1 %vm173_vm1, %v172_v43 }
 0x2c7   :  { %1226 = vmatpush1.bf16.msra.mxu1 %v1482_v35  ;;  %464 = vmatprep.mubr.f32.mxu1 %v1376_v6 }
 0x2c8   :  { %1228 = vmatprep.subr.bf16.mxu1 %v1484_v36 }
 0x2cb   :  { %1230 = vmatpush1.bf16.msra.mxu1 %v1495_v39 }
 0x2cc   :  { %1240 = vmatprep.subr.bf16.mxu1 %v1471_v31 }
 0x399   :  { %v242_v44 = vpop.f32.mrb[0].mxu1 }
 0x39a   :  { %v252_v45 = vrot.slane %v242_v44, 6  ;;  %v1512_v46 = vpop.f32.mrb[1].mxu1 }
 0x39c   :  { %v254_v47 = vadd.f32 %v252_v45, %v1454_v16 }
 0x39e   :  { %1296 = vtanh.f32 %v254_v47  ;;  %v1177_v49 = vmul.f32 -1.442695, %v254_v47 }
 0x3a0   :  { %1298 = vpow2.f32 %v1177_v49 }
 0x3a8   :  { %v1297_v48 = vpop.eup %1296 }
 0x3a9   :  { %267 = vrot.lane.b32.xlu0 %v1297_v48, %s1377_s1 }
 0x3aa   :  { %v1299_v50 = vpop.eup %1298 }
 0x3ab   :  { %v258_v51 = vadd.f32 1.0, %v1299_v50 }
 0x3ad   :  { %1300 = vrcp.f32 %v258_v51 }
 0x3b7   :  { %v1301_v52 = vpop.eup %1300 }
 0x3b8   :  { %v265_v56 = vmul.f32 %v1301_v52, %v263_v55 }
 0x41b   :  { %v268_v53 = vpop.permute.xlu0 %267 }
 0x41c   :  { %v270_v54 = vmul.f32 %v1301_v52, %v268_v53  ;;  %v1567_v53 = vadd.f32 %v1529_v1, %v1451_v14 }
 0x41e   :  { %272 = vrot.lane.b32.xlu1 %v270_v54, %s1377_s1 }
 0x490   :  { %v273_v57 = vpop.permute.xlu1 %272 }
 0x491   :  { %v275_v58 = vadd.f32 %v273_v57, %v265_v56 }
 0x493   :  { %1302 = vtanh.f32 %v275_v58  ;;  %v375_v20 = vrot.slane %v275_v58, 6 }
 0x49d   :  { %v1303_v61 = vpop.eup %1302 }
 0x49e   :  { %278 = vrot.lane.b32.xlu0 %v1303_v61, %s1377_s1 }
 0x510   :  { %v279_v62 = vpop.permute.xlu0 %278 }
 0x511   :  { %v281_v63 = vmul.f32 %v1301_v52, %v279_v62 }
 0x513   :  { %v283_v0 = vrot.slane %v281_v63, 2 }
 0x515   :  { %284 = vrot.lane.b32.xlu1 %v283_v0, %s1378_s3 }
 0x587   :  { %v285_v3 = vpop.permute.xlu1 %284 }
 0x588   :  { %1178 = vmatmul.mubr.msk.f32.vlgmr.msra.gmra.mrb[6].mxu0 %vm173_vm1, %v285_v3 }
 0x589   :  { %1234 = vmatpush1.bf16.msra.mxu0 %v1482_v35  ;;  %576 = vmatprep.mubr.f32.mxu0 %v1376_v6 }
 0x58a   :  { %1236 = vmatprep.subr.bf16.mxu0 %v1484_v36 }
 0x58d   :  { %1238 = vmatpush1.bf16.msra.mxu0 %v1495_v39 }
 0x58e   :  { %1248 = vmatprep.subr.bf16.mxu0 %v1471_v31 }
 0x65b   :  { %v354_v4 = vpop.f32.mrb[6].mxu0 }
 0x65c   :  { %v364_v5 = vrot.slane %v354_v4, 4  ;;  %v1539_v7 = vpop.f32.mrb[7].mxu0 }
 0x65e   :  { %v366_v8 = vadd.f32 %v364_v5, %v1454_v16 }
 0x660   :  { %1304 = vtanh.f32 %v366_v8  ;;  %v1179_v10 = vmul.f32 -1.442695, %v366_v8 }
 0x662   :  { %1306 = vpow2.f32 %v1179_v10 }
 0x66a   :  { %v1305_v9 = vpop.eup %1304 }
 0x66b   :  { %379 = vrot.lane.b32.xlu0 %v1305_v9, %s1377_s1 }
 0x66c   :  { %v1307_v11 = vpop.eup %1306 }
 0x66d   :  { %v370_v13 = vadd.f32 1.0, %v1307_v11 }
 0x66f   :  { %1308 = vrcp.f32 %v370_v13 }
 0x679   :  { %v1309_v15 = vpop.eup %1308 }
 0x67a   :  { %v377_v21 = vmul.f32 %v1309_v15, %v375_v20 }
 0x6dd   :  { %v380_v18 = vpop.permute.xlu0 %379 }
 0x6de   :  { %v382_v19 = vmul.f32 %v1309_v15, %v380_v18 }
 0x6e0   :  { %384 = vrot.lane.b32.xlu1 %v382_v19, %s1377_s1 }
 0x752   :  { %v385_v22 = vpop.permute.xlu1 %384 }
 0x753   :  { %v387_v23 = vadd.f32 %v385_v22, %v377_v21 }
 0x755   :  { %1310 = vtanh.f32 %v387_v23  ;;  %v487_v44 = vrot.slane %v387_v23, 6 }
 0x75f   :  { %v1311_v24 = vpop.eup %1310 }
 0x760   :  { %390 = vrot.lane.b32.xlu0 %v1311_v24, %s1377_s1 }
 0x7d2   :  { %v391_v25 = vpop.permute.xlu0 %390 }
 0x7d3   :  { %v393_v26 = vmul.f32 %v1309_v15, %v391_v25 }
 0x7d5   :  { %v395_v27 = vrot.slane %v393_v26, 4 }
 0x7d7   :  { %396 = vrot.lane.b32.xlu1 %v395_v27, %s1378_s3 }
 0x849   :  { %v397_v28 = vpop.permute.xlu1 %396 }
 0x84a   :  { %1180 = vmatmul.mubr.msk.f32.vlgmr.msra.gmra.mrb[2].mxu1 %vm173_vm1, %v397_v28 }
 0x84b   :  { %1242 = vmatpush1.bf16.msra.mxu1 %v1482_v35  ;;  %681 = vmatprep.mubr.f32.mxu1 %v1376_v6 }
 0x84c   :  { %1244 = vmatprep.subr.bf16.mxu1 %v1484_v36 }
 0x84f   :  { %1246 = vmatpush1.bf16.msra.mxu1 %v1495_v39 }
 0x850   :  { %1256 = vmatprep.subr.bf16.mxu1 %v1471_v31 }
 0x91d   :  { %v466_v29 = vpop.f32.mrb[2].mxu1 }
 0x91e   :  { %v476_v30 = vrot.slane %v466_v29, 2  ;;  %v1552_v32 = vpop.f32.mrb[3].mxu1 }
 0x920   :  { %v478_v33 = vadd.f32 %v476_v30, %v1454_v16 }
 0x922   :  { %1312 = vtanh.f32 %v478_v33  ;;  %v1181_v37 = vmul.f32 -1.442695, %v478_v33 }
 0x924   :  { %1314 = vpow2.f32 %v1181_v37 }
 0x92c   :  { %v1313_v34 = vpop.eup %1312 }
 0x92d   :  { %491 = vrot.lane.b32.xlu0 %v1313_v34, %s1377_s1 }
 0x92e   :  { %v1315_v38 = vpop.eup %1314 }
 0x92f   :  { %v482_v40 = vadd.f32 1.0, %v1315_v38 }
 0x931   :  { %1316 = vrcp.f32 %v482_v40 }
 0x93b   :  { %v1317_v41 = vpop.eup %1316 }
 0x93c   :  { %v489_v45 = vmul.f32 %v1317_v41, %v487_v44 }
 0x99f   :  { %v492_v42 = vpop.permute.xlu0 %491 }
 0x9a0   :  { %v494_v43 = vmul.f32 %v1317_v41, %v492_v42 }
 0x9a2   :  { %496 = vrot.lane.b32.xlu1 %v494_v43, %s1377_s1 }
 0xa14   :  { %v497_v47 = vpop.permute.xlu1 %496 }
 0xa15   :  { %v499_v48 = vadd.f32 %v497_v47, %v489_v45 }
 0xa17   :  { %1318 = vtanh.f32 %v499_v48  ;;  %v593_v14 = vrot.slane %v499_v48, 6 }
 0xa21   :  { %v1319_v16 = vpop.eup %1318 }
 0xa22   :  { %502 = vrot.lane.b32.xlu0 %v1319_v16, %s1377_s1 }
 0xa94   :  { %v503_v49 = vpop.permute.xlu0 %502 }
 0xa95   :  { %v505_v50 = vmul.f32 %v1317_v41, %v503_v49 }
 0xa97   :  { %v507_v51 = vrot.slane %v505_v50, 6 }
 0xa99   :  { %508 = vrot.lane.b32.xlu1 %v507_v51, %s1378_s3 }
 0xb0b   :  { %v509_v52 = vpop.permute.xlu1 %508 }
 0xb0c   :  { %1182 = vmatmul.mubr.msk.f32.vlgmr.msra.gmra.mrb[8].mxu0 %vm173_vm1, %v509_v52 }
 0xb0d   :  { %1250 = vmatpush1.bf16.msra.mxu0 %v1482_v35  ;;  %793 = vmatprep.mubr.f32.mxu0 %v1376_v6 }
 0xb0e   :  { %1252 = vmatprep.subr.bf16.mxu0 %v1484_v36 }
 0xb11   :  { %1254 = vmatpush1.bf16.msra.mxu0 %v1495_v39 }
 0xb12   :  { %1264 = vmatprep.subr.bf16.mxu0 %v1471_v31 }
 0xbdf   :  { %v578_v54 = vpop.f32.mrb[8].mxu0 }
 0xbe0   :  { %v584_v55 = vadd.f32 %v578_v54, %v1567_v53  ;;  %v1570_v56 = vpop.f32.mrb[9].mxu0 }
 0xbe2   :  { %1320 = vtanh.f32 %v584_v55  ;;  %v1183_v58 = vmul.f32 -1.442695, %v584_v55 }
 0xbe4   :  { %1322 = vpow2.f32 %v1183_v58 }
 0xbec   :  { %v1321_v57 = vpop.eup %1320 }
 0xbed   :  { %597 = vrot.lane.b32.xlu0 %v1321_v57, %s1377_s1 }
 0xbee   :  { %v1323_v59 = vpop.eup %1322 }
 0xbef   :  { %v588_v60 = vadd.f32 1.0, %v1323_v59 }
 0xbf1   :  { %1324 = vrcp.f32 %v588_v60 }
 0xbfb   :  { %v1325_v61 = vpop.eup %1324 }
 0xbfc   :  { %v595_v63 = vmul.f32 %v1325_v61, %v593_v14 }
 0xc5f   :  { %v598_v31 = vpop.permute.xlu0 %597 }
 0xc60   :  { %v600_v62 = vmul.f32 %v1325_v61, %v598_v31 }
 0xc62   :  { %602 = vrot.lane.b32.xlu1 %v600_v62, %s1377_s1 }
 0xcd4   :  { %v603_v0 = vpop.permute.xlu1 %602 }
 0xcd5   :  { %v605_v1 = vadd.f32 %v603_v0, %v595_v63 }
 0xcd7   :  { %1326 = vtanh.f32 %v605_v1  ;;  %v704_v24 = vrot.slane %v605_v1, 6 }
 0xce1   :  { %v1327_v3 = vpop.eup %1326 }
 0xce2   :  { %608 = vrot.lane.b32.xlu0 %v1327_v3, %s1377_s1 }
 0xd54   :  { %v609_v4 = vpop.permute.xlu0 %608 }
 0xd55   :  { %v611_v5 = vmul.f32 %v1325_v61, %v609_v4 }
 0xd57   :  { %613 = vrot.lane.b32.xlu1 %v611_v5, %s1378_s3 }
 0xdc9   :  { %v614_v8 = vpop.permute.xlu1 %613 }
 0xdca   :  { %1184 = vmatmul.mubr.msk.f32.vlgmr.msra.gmra.mrb[4].mxu1 %vm173_vm1, %v614_v8 }
 0xdcb   :  { %1258 = vmatpush1.bf16.msra.mxu1 %v1482_v35  ;;  %905 = vmatprep.mubr.f32.mxu1 %v1376_v6 }
 0xdcc   :  { %1260 = vmatprep.subr.bf16.mxu1 %v1484_v36 }
 0xdcf   :  { %1262 = vmatpush1.bf16.msra.mxu1 %v1495_v39 }
 0xe9d   :  { %v683_v9 = vpop.f32.mrb[4].mxu1 }
 0xe9e   :  { %v693_v10 = vrot.slane %v683_v9, 6  ;;  %v1581_v11 = vpop.f32.mrb[5].mxu1  ;;  %v124_v9 = vadd.f32 %v1456_v17, %v1447_v12  ;;  %v472_v17 = vrot.slane %v1552_v32, 2 }
 0xea0   :  { %v695_v13 = vadd.f32 %v693_v10, %v1567_v53 }
 0xea2   :  { %1328 = vtanh.f32 %v695_v13  ;;  %v1185_v18 = vmul.f32 -1.442695, %v695_v13 }
 0xea4   :  { %1330 = vpow2.f32 %v1185_v18 }
 0xeac   :  { %v1329_v15 = vpop.eup %1328 }
 0xead   :  { %708 = vrot.lane.b32.xlu0 %v1329_v15, %s1377_s1  ;;  %v130_v15 = vadd.f32 %v1531_v2, %v1447_v12  ;;  %v474_v2 = vadd.f32 %v472_v17, %v124_v9 }
 0xeae   :  { %v1331_v19 = vpop.eup %1330 }
 0xeaf   :  { %v699_v20 = vadd.f32 1.0, %v1331_v19  ;;  %v583_v19 = vadd.f32 %v1570_v56, %v130_v15  ;;  %v1030_v56 = vrot.slane %v474_v2, 4 }
 0xeb1   :  { %1332 = vrcp.f32 %v699_v20 }
 0xebb   :  { %v1333_v21 = vpop.eup %1332 }
 0xebc   :  { %v706_v25 = vmul.f32 %v1333_v21, %v704_v24 }
 0xf1f   :  { %v709_v22 = vpop.permute.xlu0 %708 }
 0xf20   :  { %v711_v23 = vmul.f32 %v1333_v21, %v709_v22 }
 0xf22   :  { %713 = vrot.lane.b32.xlu1 %v711_v23, %s1377_s1 }
 0xf94   :  { %v714_v26 = vpop.permute.xlu1 %713 }
 0xf95   :  { %v716_v27 = vadd.f32 %v714_v26, %v706_v25  ;;  %v1382_v26 = vmov 0.0|0.0  }
 0xf96   :  { %1271 = vmatprep.subr.bf16.mxu1 %v1382_v26 }
 0xf97   :  { %1334 = vtanh.f32 %v716_v27 }
 0xfa1   :  { %v1335_v28 = vpop.eup %1334 }
 0xfa2   :  { %719 = vrot.lane.b32.xlu0 %v1335_v28, %s1377_s1 }
0x1014   :  { %v720_v29 = vpop.permute.xlu0 %719 }
0x1015   :  { %v722_v30 = vmul.f32 %v1333_v21, %v720_v29  ;;  %v1035_v21 = vrot.slane %v583_v19, 6 }
0x1017   :  { %v724_v33 = vrot.slane %v722_v30, 2 }
0x1019   :  { %725 = vrot.lane.b32.xlu1 %v724_v33, %s1378_s3 }
0x108b   :  { %v726_v34 = vpop.permute.xlu1 %725 }
0x108c   :  { %1186 = vmatmul.mubr.msk.f32.vlgmr.msra.gmra.mrb[10].mxu0 %vm173_vm1, %v726_v34  ;;  %v1071_v34 = vld [vmem:[%s1649_s4] sm:$0xff] }
0x108d   :  { %1266 = vmatpush1.bf16.msra.mxu0 %v1482_v35  ;;  %1017 = vmatprep.mubr.f32.mxu0 %v1376_v6 }
0x108e   :  { %1268 = vmatprep.subr.bf16.mxu0 %v1484_v36  ;;  %v816_v36 = vrot.slane %v716_v27, 6  ;;  %v689_v27 = vrot.slane %v1581_v11, 6  ;;  %v1072_v11 = vld [vmem:[%s1649_s4 + $0x8] sm:$0xff] }
0x1090   :  { %v691_v29 = vadd.f32 %v689_v27, %v130_v15 }
0x1091   :  { %1270 = vmatpush1.bf16.msra.mxu0 %v1495_v39 }
0x115f   :  { %v795_v37 = vpop.f32.mrb[10].mxu0 }
0x1160   :  { %v805_v38 = vrot.slane %v795_v37, 4  ;;  %v797_v40 = vpop.f32.mrb[11].mxu0  ;;  %v1272_v37 = vpack.c.bf16 %v1072_v11, %v1071_v34 }
0x1161   :  { %v801_v20 = vrot.slane %v797_v40, 4 }
0x1162   :  { %v807_v41 = vadd.f32 %v805_v38, %v1567_v53 }
0x1163   :  { %v803_v22 = vadd.f32 %v801_v20, %v130_v15 }
0x1164   :  { %1336 = vtanh.f32 %v807_v41  ;;  %v1187_v43 = vmul.f32 -1.442695, %v807_v41 }
0x1166   :  { %1338 = vpow2.f32 %v1187_v43 }
0x116e   :  { %v1337_v42 = vpop.eup %1336 }
0x116f   :  { %820 = vrot.lane.b32.xlu0 %v1337_v42, %s1377_s1 }
0x1170   :  { %v1339_v44 = vpop.eup %1338 }
0x1171   :  { %v811_v45 = vadd.f32 1.0, %v1339_v44  ;;  %v248_v44 = vrot.slane %v1512_v46, 6 }
0x1173   :  { %1340 = vrcp.f32 %v811_v45 }
0x117d   :  { %v1341_v35 = vpop.eup %1340 }
0x117e   :  { %v818_v39 = vmul.f32 %v1341_v35, %v816_v36 }
0x11e1   :  { %v821_v47 = vpop.permute.xlu0 %820 }
0x11e2   :  { %v823_v48 = vmul.f32 %v1341_v35, %v821_v47 }
0x11e4   :  { %825 = vrot.lane.b32.xlu1 %v823_v48, %s1377_s1 }
0x1256   :  { %v826_v16 = vpop.permute.xlu1 %825 }
0x1257   :  { %v828_v49 = vadd.f32 %v826_v16, %v818_v39 }
0x1259   :  { %1342 = vtanh.f32 %v828_v49  ;;  %v928_v3 = vrot.slane %v828_v49, 6 }
0x1263   :  { %v1343_v50 = vpop.eup %1342 }
0x1264   :  { %831 = vrot.lane.b32.xlu0 %v1343_v50, %s1377_s1 }
0x12d6   :  { %v832_v51 = vpop.permute.xlu0 %831 }
0x12d7   :  { %v834_v52 = vmul.f32 %v1341_v35, %v832_v51  ;;  %v250_v35 = vadd.f32 %v248_v44, %v124_v9 }
0x12d9   :  { %v836_v54 = vrot.slane %v834_v52, 4 }
0x12db   :  { %837 = vrot.lane.b32.xlu1 %v836_v54, %s1378_s3  ;;  %v1191_v54 = vld [vmem:[%s1650_s5] ss:$0 sm:$0xff] }
0x134d   :  { %v838_v55 = vpop.permute.xlu1 %837 }
0x134e   :  { %1188 = vmatmul.mubr.msk.f32.vlgmr.msra.gmra.mrb[6].mxu1 %vm173_vm1, %v838_v55 }
0x134f   :  { %1273 = vmatpush3.bf16.msra.mxu1 %v1272_v37  ;;  %1200 = vmatprep.mubr.msk.f32.mxu1 %vm1384_vm2, %v1376_v6 }
0x1421   :  { %v907_v57 = vpop.f32.mrb[6].mxu1 }
0x1422   :  { %v917_v58 = vrot.slane %v907_v57, 2  ;;  %v909_v59 = vpop.f32.mrb[7].mxu1 }
0x1423   :  { %v913_v28 = vrot.slane %v909_v59, 2 }
0x1424   :  { %v919_v60 = vadd.f32 %v917_v58, %v1567_v53  ;;  %v360_v53 = vrot.slane %v1539_v7, 4  ;;  %v1044_v7 = vrot.slane %v803_v22, 2 }
0x1425   :  { %v915_v30 = vadd.f32 %v913_v28, %v130_v15 }
0x1426   :  { %1344 = vtanh.f32 %v919_v60  ;;  %v1189_v31 = vmul.f32 -1.442695, %v919_v60  ;;  %v362_v10 = vadd.f32 %v360_v53, %v124_v9 }
0x1427   :  { %v1049_v33 = vrot.slane %v915_v30, 4 }
0x1428   :  { %1346 = vpow2.f32 %v1189_v31  ;;  %v1025_v18 = vrot.slane %v362_v10, 2 }
0x1430   :  { %v1345_v61 = vpop.eup %1344 }
0x1431   :  { %932 = vrot.lane.b32.xlu0 %v1345_v61, %s1377_s1 }
0x1432   :  { %v1347_v62 = vpop.eup %1346 }
0x1433   :  { %v923_v14 = vadd.f32 1.0, %v1347_v62 }
0x1435   :  { %1348 = vrcp.f32 %v923_v14 }
0x143f   :  { %v1349_v63 = vpop.eup %1348 }
0x1440   :  { %v930_v4 = vmul.f32 %v1349_v63, %v928_v3 }
0x14a3   :  { %v933_v0 = vpop.permute.xlu0 %932 }
0x14a4   :  { %v935_v1 = vmul.f32 %v1349_v63, %v933_v0 }
0x14a6   :  { %937 = vrot.lane.b32.xlu1 %v935_v1, %s1377_s1 }
0x1518   :  { %v938_v5 = vpop.permute.xlu1 %937 }
0x1519   :  { %v940_v8 = vadd.f32 %v938_v5, %v930_v4 }
0x151b   :  { %1350 = vtanh.f32 %v940_v8 }
0x1525   :  { %v1351_v13 = vpop.eup %1350 }
0x1526   :  { %943 = vrot.lane.b32.xlu0 %v1351_v13, %s1377_s1 }
0x152a   :  { %1026 = vrot.lane.b32.xlu0 %v1025_v18, %s1379_s0 }
0x152e   :  { %1036 = vrot.lane.b32.xlu0 %v1035_v21, %s1380_s9 }
0x1532   :  { %1045 = vrot.lane.b32.xlu0 %v1044_v7, %s1381_s10 }
0x1598   :  { %v944_v23 = vpop.permute.xlu0 %943 }
0x1599   :  { %v946_v24 = vmul.f32 %v1349_v63, %v944_v23 }
0x159b   :  { %v948_v25 = vrot.slane %v946_v24, 6 }
0x159c   :  { %v1027_v43 = vpop.permute.xlu0 %1026 }
0x159d   :  { %949 = vrot.lane.b32.xlu1 %v948_v25, %s1378_s3  ;;  %v1058_v48 = vsel %vm45_vm0, %v250_v35, %v1027_v43 }
0x15a0   :  { %v1037_v47 = vpop.permute.xlu0 %1036 }
0x15a1   :  { %1031 = vrot.lane.b32.xlu1 %v1030_v56, %s1377_s1  ;;  %s1385_s1 = smov 112  }
0x15a5   :  { %1040 = vrot.lane.b32.xlu1 %v691_v29, %s1378_s3 }
0x15a9   :  { %1050 = vrot.lane.b32.xlu1 %v1049_v33, %s1383_s11 }
0x160f   :  { %v950_v32 = vpop.permute.xlu1 %949 }
0x1610   :  { %1190 = vmatmul.mubr.msk.f32.vlgmr.msra.gmra.mrb[4].mxu0 %vm173_vm1, %v950_v32 }
0x1613   :  { %v1032_v45 = vpop.permute.xlu1 %1031 }
0x1614   :  { %v1059_v6 = vsel %vm173_vm1, %v1058_v48, %v1032_v45 }
0x1615   :  { %v1061_v39 = vsel %vm1060_vm3, %v1059_v6, %v1037_v47 }
0x1617   :  { %v1041_v36 = vpop.permute.xlu1 %1040 }
0x1618   :  { %v1063_v16 = vsel %vm1062_vm4, %v1061_v39, %v1041_v36 }
0x161b   :  { %v1051_v49 = vpop.permute.xlu1 %1050 }
0x16e3   :  { %v1019_v38 = vpop.f32.mrb[4].mxu0 }
0x16e4   :  { %v1020_v40 = vpop.f32.mrb[5].mxu0 }
0x16e5   :  { %v1274_v41 = vadd.f32 %v1020_v40, %v1447_v12  ;;  %v1046_v12 = vpop.permute.xlu0 %1045 }
0x16e6   :  { %v1065_v50 = vsel %vm1064_vm5, %v1063_v16, %v1046_v12 }
0x16e7   :  { %v1054_v42 = vrot.slane %v1274_v41, 6  ;;  %1201 = vmatmul.mubr.msk.f32.vlgmr.msra.gmra.mrb[8].mxu1 %vm45_vm0, %v1274_v41  ;;  %v1067_v51 = vsel %vm1066_vm6, %v1065_v50, %v1051_v49 }
0x16e9   :  { %1055 = vrot.lane.b32.xlu0 %v1054_v42, %s1385_s1 }
0x175b   :  { %v1056_v46 = vpop.permute.xlu0 %1055 }
0x175c   :  { %v1069_v52 = vsel %vm1068_vm7, %v1067_v51, %v1056_v46 }
0x175d   :  { %1070 = vst [vmem:[%s1652_s7 - $0x2] sm:$0xc] %v1069_v52 }
0x17ba   :  { %v1148_v55 = vpop.f32.mrb[8].mxu1 }
0x17bb   :  { %v1149_v57 = vadd.f32 %v1191_v54, %v1148_v55  ;;  %v1202_v58 = vpop.f32.mrb[9].mxu1 }
0x17bd   :  { %1153 = vst.msk [vmem:[#allocation2] sm:$0x3] %vm1152_vm8, %v1149_v57 }
0x17be   :  { %1363 = shalt.err (!%p1360_p4)
}
0x17bf   :  { %s1364_s22 = scalar_lea.hbm %s1651_s6, 32 }
0x17c0   :  { %p1365_p5 = scmp.ne.s32.totalorder %s1651_s6, %s1364_s22  ;;  %p1368_p6 = scmp.lt.u32.totalorder %s1364_s22, %s1651_s6 }
0x17c2   :  { %p1370_p7 = pnand %p1368_p6, %p1365_p5 }
0x17c4   :  { %1373 = shalt.err (!%p1370_p7)
}
0x17c5   :  { %1163 = dma.vmem_to_hbm [thread:$0]  %s1161_s19, 32, %s1651_s6, [#allocation3]  }
0x17c6   :  { %1374 = dma.done.wait [#allocation3], 32  }
0x17c7   :  { %1375 = vsyncadd [#allocation3], 4294967264 }
0x17c8   :  { %1171 = vsyncpa [#allocation3], 1 }

</bundles_post_ra>
